<compile_context>
chip_gen: v7x
topology: tpu7x:2x2x1
jax: 0.10.0
libtpu: 0.0.40
codegen_flags: <defaults>
</compile_context>

<pallas_src>
import functools
import math

import jax
import jax.numpy as jnp
from jax.experimental import pallas as pl
from jax.experimental.pallas import tpu as pltpu

LANES = 128
MAX_TILE_ROWS = 4096                 # (4096, 128) f32 = 2 MiB per input per buffer
VMEM_LIMIT_BYTES = 48 * 1024 * 1024  # 2 in x 2 buf x 2 MiB + temporaries << 48 MiB


def _num_tensorcores():
    """Best-effort TensorCore count for device 0 (2 on v7x, else 1)."""
    try:
        kind = jax.devices()[0].device_kind.lower()
    except Exception:
        return 1
    return 2 if ("v7" in kind or "7x" in kind) else 1


def _focal_kernel(x_ref, t_ref, o_ref, *, alpha, gamma, total_n, num_blocks,
                  s_per_part, tile_rows):
    p = pl.program_id(0)          # partial-sum / megacore axis ("parallel")
    s = pl.program_id(1)          # row-block axis within the part ("arbitrary")
    blk = p * s_per_part + s      # logical row-block index
    last = num_blocks - 1

    # Fresh (1, 128) lane accumulator for this part; stays resident across s.
    @pl.when(s == 0)
    def _():
        o_ref[...] = jnp.zeros_like(o_ref)

    x = x_ref[...].astype(jnp.float32)
    t = t_ref[...].astype(jnp.float32)

    # Numerically-stable BCE-with-logits (matches torch, reduction='none').
    bce = jnp.maximum(x, 0.0) - x * t + jnp.log1p(jnp.exp(-jnp.abs(x)))

    # targets.type(torch.long): truncation toward zero.
    at = jnp.trunc(t) * (2.0 * alpha - 1.0) + (1.0 - alpha)

    pt = jnp.exp(-bce)
    om = 1.0 - pt
    g = float(gamma)
    if g.is_integer() and 1.0 <= g <= 8.0:
        # Integer gamma (default 2): pure multiplies instead of pow (log+exp).
        mod = om
        for _ in range(int(g) - 1):
            mod = mod * om
        fl = at * mod * bce
    elif g == 0.0:
        fl = at * bce
    else:
        fl = at * (om ** jnp.float32(g)) * bce

    # Hot path: every block except the final one is fully valid -> no mask.
    # Row-reduce to one (1, 128) lane vector (vreg tree-adds + one XLU sublane
    # reduce) and accumulate; no full-tile accumulator load/store per step.
    @pl.when(blk < last)
    def _():
        o_ref[...] += jnp.sum(fl, axis=0, keepdims=True)

    # Final logical block: mask out lane / sublane padding past total_n.
    # (Clamped trailing steps, blk > last, fall through both guards: no-op.)
    @pl.when(blk == last)
    def _():
        row = jax.lax.broadcasted_iota(jnp.int32, fl.shape, 0) + blk * tile_rows
        full_rows = total_n // LANES
        rem = total_n % LANES
        if rem == 0:
            valid = row < full_rows
        else:
            col = jax.lax.broadcasted_iota(jnp.int32, fl.shape, 1)
            valid = (row < full_rows) | ((row == full_rows) & (col < rem))
        o_ref[...] += jnp.sum(jnp.where(valid, fl, 0.0), axis=0, keepdims=True)


def focal_loss(inputs, targets, alpha=0.25, gamma=2.0, num_parts=None):
    """Pallas implementation of FocalLoss.forward. Returns a scalar f32."""
    assert inputs.shape == targets.shape
    total_n = int(math.prod(inputs.shape))

    full_rows, rem = divmod(total_n, LANES)
    rows = full_rows + (1 if rem else 0)

    x = inputs.reshape(-1)
    t = targets.reshape(-1)
    if rem:
        # Only hit when total_n % 128 != 0; pads < 128 elements.
        x = jnp.pad(x, (0, LANES - rem))
        t = jnp.pad(t, (0, LANES - rem))
    x2 = x.reshape(rows, LANES)
    t2 = t.reshape(rows, LANES)

    tile_rows = int(min(MAX_TILE_ROWS, rows))
    num_blocks = int(pl.cdiv(rows, tile_rows))

    # 2-way split only where there are 2 TensorCores (v7x); on single-TC
    # chips the split is pure overhead.
    if num_parts is None:
        num_parts = _num_tensorcores()
    num_parts = int(num_parts) if num_blocks >= 2 else 1
    s_per_part = int(pl.cdiv(num_blocks, num_parts))
    need_clamp = num_parts * s_per_part > num_blocks

    if need_clamp:
        # Clamp so trailing (skipped) steps of the last part stay in bounds.
        def in_map(p, s):
            return (jnp.minimum(p * s_per_part + s, num_blocks - 1), 0)
    else:
        def in_map(p, s):
            return (p * s_per_part + s, 0)

    kernel = functools.partial(
        _focal_kernel,
        alpha=float(alpha),
        gamma=float(gamma),
        total_n=total_n,
        num_blocks=num_blocks,
        s_per_part=s_per_part,
        tile_rows=tile_rows,
    )

    out = pl.pallas_call(
        kernel,
        out_shape=jax.ShapeDtypeStruct((num_parts, 1, LANES), jnp.float32),
        grid_spec=pltpu.PrefetchScalarGridSpec(
            num_scalar_prefetch=0,
            grid=(num_parts, s_per_part),
            in_specs=[
                pl.BlockSpec((tile_rows, LANES), in_map),
                pl.BlockSpec((tile_rows, LANES), in_map),
            ],
            out_specs=pl.BlockSpec((None, 1, LANES), lambda p, s: (p, 0, 0)),
        ),
        compiler_params=pltpu.CompilerParams(
            dimension_semantics=("parallel", "arbitrary"),
            vmem_limit_bytes=VMEM_LIMIT_BYTES,
        ),
    )(x2, t2)

    # Tiny final reduce + mean on the XLA side (num_parts * 512 B).
    return jnp.sum(out) / jnp.float32(total_n)


def _focal_loss_ref(inputs, targets, alpha=0.25, gamma=2.0):
    x = inputs.astype(jnp.float32)
    t = targets.astype(jnp.float32)
    bce = jnp.maximum(x, 0.0) - x * t + jnp.log1p(jnp.exp(-jnp.abs(x)))
    at = jnp.trunc(t) * (2.0 * alpha - 1.0) + (1.0 - alpha)
    pt = jnp.exp(-bce)
    return jnp.mean(at * (1.0 - pt) ** gamma * bce)


if __name__ == "__main__":
    key = jax.random.PRNGKey(0)
    k1, k2 = jax.random.split(key)

    # Small shapes consistent with the module (loss is elementwise + mean).
    B, C, H, W = 2, 4, 16, 16
    logits = jax.random.normal(k1, (B, C, H, W), dtype=jnp.float32)
    targets = jax.random.bernoulli(k2, p=0.3, shape=(B, C, H, W)).astype(jnp.float32)

    loss = jax.block_until_ready(focal_loss(logits, targets, alpha=0.25, gamma=2.0))
    ref = jax.block_until_ready(_focal_loss_ref(logits, targets, alpha=0.25, gamma=2.0))
    assert jnp.allclose(loss, ref, rtol=1e-5, atol=1e-6), (loss, ref)

    print("KERNEL_OK")
</pallas_src>

<mosaic_0001>
module attributes {stable_mosaic.version = 11 : i64} {
  func.func @_focal_kernel(%arg0: i32, %arg1: i32, %arg2: memref<16x128xf32, #tpu.memory_space<vmem>>, %arg3: memref<16x128xf32, #tpu.memory_space<vmem>>, %arg4: memref<1x1x128xf32, #tpu.memory_space<vmem>>) attributes {dimension_semantics = [#tpu.dimension_semantics<parallel>, #tpu.dimension_semantics<arbitrary>], iteration_bounds = array<i64: 1, 1>, scalar_prefetch = 0 : i64, scratch_operands = 0 : i64, tpu.core_type = #tpu.core_type<tc>, window_params = [{transform_indices = @transform_0, window_bounds = array<i64: 16, 128>}, {transform_indices = @transform_1, window_bounds = array<i64: 16, 128>}, {transform_indices = @transform_2, window_bounds = array<i64: 1, 1, 128>}]} {
    %c1_i32 = arith.constant 1 : i32
    %0 = arith.muli %arg0, %c1_i32 : i32
    %1 = arith.addi %0, %arg1 : i32
    %c0_i32 = arith.constant 0 : i32
    %2 = arith.cmpi eq, %arg1, %c0_i32 : i32
    %3 = arith.extui %2 : i1 to i32
    %c0_i32_0 = arith.constant 0 : i32
    %4 = arith.cmpi ne, %3, %c0_i32_0 : i32
    scf.if %4 {
      %cst_14 = arith.constant 0.000000e+00 : f32
      %40 = vector.broadcast %cst_14 : f32 to vector<1x128xf32>
      %c0_15 = arith.constant 0 : index
      %c0_16 = arith.constant 0 : index
      %c0_17 = arith.constant 0 : index
      %41 = vector.load %arg4[%c0_15, %c0_16, %c0_17] : memref<1x1x128xf32, #tpu.memory_space<vmem>>, vector<1x1x128xf32>
      %42 = vector.shape_cast %41 : vector<1x1x128xf32> to vector<1x128xf32>
      %43 = vector.shape_cast %40 : vector<1x128xf32> to vector<1x1x128xf32>
      tpu.vector_store %arg4[%c0_15, %c0_16, %c0_17], %43 {strides = array<i32>} : memref<1x1x128xf32, #tpu.memory_space<vmem>>, vector<1x1x128xf32>,
    } else {
    }
    %c0 = arith.constant 0 : index
    %c0_1 = arith.constant 0 : index
    %5 = vector.load %arg2[%c0, %c0_1] : memref<16x128xf32, #tpu.memory_space<vmem>>, vector<16x128xf32>
    %c0_2 = arith.constant 0 : index
    %c0_3 = arith.constant 0 : index
    %6 = vector.load %arg3[%c0_2, %c0_3] : memref<16x128xf32, #tpu.memory_space<vmem>>, vector<16x128xf32>
    %cst = arith.constant 0.000000e+00 : f32
    %7 = vector.broadcast %cst : f32 to vector<16x128xf32>
    %8 = arith.maximumf %5, %7 : vector<16x128xf32>
    %9 = arith.mulf %5, %6 : vector<16x128xf32>
    %10 = arith.subf %8, %9 : vector<16x128xf32>
    %11 = math.absf %5 : vector<16x128xf32>
    %cst_4 = arith.constant 0.000000e+00 : f32
    %12 = vector.broadcast %cst_4 : f32 to vector<16x128xf32>
    %13 = arith.subf %12, %11 : vector<16x128xf32>
    %14 = math.exp %13 : vector<16x128xf32>
    %15 = math.log1p %14 : vector<16x128xf32>
    %16 = arith.addf %10, %15 : vector<16x128xf32>
    %cst_5 = arith.constant 0.000000e+00 : f32
    %17 = vector.broadcast %cst_5 : f32 to vector<16x128xf32>
    %18 = arith.cmpf olt, %6, %17 : vector<16x128xf32>
    %19 = math.ceil %6 : vector<16x128xf32>
    %20 = math.floor %6 : vector<16x128xf32>
    %21 = arith.select %18, %19, %20 : vector<16x128xi1>, vector<16x128xf32>
    %cst_6 = arith.constant -5.000000e-01 : f32
    %22 = vector.broadcast %cst_6 : f32 to vector<16x128xf32>
    %23 = arith.mulf %21, %22 : vector<16x128xf32>
    %cst_7 = arith.constant 7.500000e-01 : f32
    %24 = vector.broadcast %cst_7 : f32 to vector<16x128xf32>
    %25 = arith.addf %23, %24 : vector<16x128xf32>
    %cst_8 = arith.constant 0.000000e+00 : f32
    %26 = vector.broadcast %cst_8 : f32 to vector<16x128xf32>
    %27 = arith.subf %26, %16 : vector<16x128xf32>
    %28 = math.exp %27 : vector<16x128xf32>
    %cst_9 = arith.constant 1.000000e+00 : f32
    %29 = vector.broadcast %cst_9 : f32 to vector<16x128xf32>
    %30 = arith.subf %29, %28 : vector<16x128xf32>
    %31 = arith.mulf %30, %30 : vector<16x128xf32>
    %32 = arith.mulf %25, %31 : vector<16x128xf32>
    %33 = arith.mulf %32, %16 : vector<16x128xf32>
    %c0_i32_10 = arith.constant 0 : i32
    %34 = arith.cmpi slt, %1, %c0_i32_10 : i32
    %35 = arith.extui %34 : i1 to i32
    %c0_i32_11 = arith.constant 0 : i32
    %36 = arith.cmpi ne, %35, %c0_i32_11 : i32
    scf.if %36 {
      %c0_14 = arith.constant 0 : index
      %c0_15 = arith.constant 0 : index
      %c0_16 = arith.constant 0 : index
      %40 = vector.load %arg4[%c0_14, %c0_15, %c0_16] : memref<1x1x128xf32, #tpu.memory_space<vmem>>, vector<1x1x128xf32>
      %41 = vector.shape_cast %40 : vector<1x1x128xf32> to vector<1x128xf32>
      %cst_17 = arith.constant dense<0.000000e+00> : vector<128xf32>
      %42 = vector.multi_reduction <add>, %33, %cst_17 [0] : vector<16x128xf32> to vector<128xf32>
      %43 = vector.shape_cast %42 : vector<128xf32> to vector<1x128xf32>
      %44 = arith.addf %41, %43 : vector<1x128xf32>
      %c0_18 = arith.constant 0 : index
      %c0_19 = arith.constant 0 : index
      %c0_20 = arith.constant 0 : index
      %45 = vector.load %arg4[%c0_18, %c0_19, %c0_20] : memref<1x1x128xf32, #tpu.memory_space<vmem>>, vector<1x1x128xf32>
      %46 = vector.shape_cast %45 : vector<1x1x128xf32> to vector<1x128xf32>
      %47 = vector.shape_cast %44 : vector<1x128xf32> to vector<1x1x128xf32>
      tpu.vector_store %arg4[%c0_18, %c0_19, %c0_20], %47 {strides = array<i32>} : memref<1x1x128xf32, #tpu.memory_space<vmem>>, vector<1x1x128xf32>,
    } else {
    }
    %c0_i32_12 = arith.constant 0 : i32
    %37 = arith.cmpi eq, %1, %c0_i32_12 : i32
    %38 = arith.extui %37 : i1 to i32
    %c0_i32_13 = arith.constant 0 : i32
    %39 = arith.cmpi ne, %38, %c0_i32_13 : i32
    scf.if %39 {
      %40 = tpu.iota {dimensions = array<i32: 0>} : vector<16x128xi32>
      %c16_i32 = arith.constant 16 : i32
      %41 = arith.muli %1, %c16_i32 : i32
      %42 = vector.broadcast %41 : i32 to vector<16x128xi32>
      %43 = arith.addi %40, %42 : vector<16x128xi32>
      %c16_i32_14 = arith.constant 16 : i32
      %44 = vector.broadcast %c16_i32_14 : i32 to vector<16x128xi32>
      %45 = arith.cmpi slt, %43, %44 : vector<16x128xi32>
      %c0_15 = arith.constant 0 : index
      %c0_16 = arith.constant 0 : index
      %c0_17 = arith.constant 0 : index
      %46 = vector.load %arg4[%c0_15, %c0_16, %c0_17] : memref<1x1x128xf32, #tpu.memory_space<vmem>>, vector<1x1x128xf32>
      %47 = vector.shape_cast %46 : vector<1x1x128xf32> to vector<1x128xf32>
      %cst_18 = arith.constant 0.000000e+00 : f32
      %48 = vector.broadcast %cst_18 : f32 to vector<16x128xf32>
      %49 = arith.select %45, %33, %48 : vector<16x128xi1>, vector<16x128xf32>
      %cst_19 = arith.constant dense<0.000000e+00> : vector<128xf32>
      %50 = vector.multi_reduction <add>, %49, %cst_19 [0] : vector<16x128xf32> to vector<128xf32>
      %51 = vector.shape_cast %50 : vector<128xf32> to vector<1x128xf32>
      %52 = arith.addf %47, %51 : vector<1x128xf32>
      %c0_20 = arith.constant 0 : index
      %c0_21 = arith.constant 0 : index
      %c0_22 = arith.constant 0 : index
      %53 = vector.load %arg4[%c0_20, %c0_21, %c0_22] : memref<1x1x128xf32, #tpu.memory_space<vmem>>, vector<1x1x128xf32>
      %54 = vector.shape_cast %53 : vector<1x1x128xf32> to vector<1x128xf32>
      %55 = vector.shape_cast %52 : vector<1x128xf32> to vector<1x1x128xf32>
      tpu.vector_store %arg4[%c0_20, %c0_21, %c0_22], %55 {strides = array<i32>} : memref<1x1x128xf32, #tpu.memory_space<vmem>>, vector<1x1x128xf32>,
    } else {
    }
    return
  }
  func.func @transform_0(%arg0: i32, %arg1: i32) -> (i32, i32) {
    %c1_i32 = arith.constant 1 : i32
    %0 = arith.muli %arg0, %c1_i32 : i32
    %1 = arith.addi %0, %arg1 : i32
    %c0_i32 = arith.constant 0 : i32
    %c0_i32_0 = arith.constant 0 : i32
    return %1, %c0_i32 : i32, i32
  }
  func.func @transform_1(%arg0: i32, %arg1: i32) -> (i32, i32) {
    %c1_i32 = arith.constant 1 : i32
    %0 = arith.muli %arg0, %c1_i32 : i32
    %1 = arith.addi %0, %arg1 : i32
    %c0_i32 = arith.constant 0 : i32
    %c0_i32_0 = arith.constant 0 : i32
    return %1, %c0_i32 : i32, i32
  }
  func.func @transform_2(%arg0: i32, %arg1: i32) -> (i32, i32, i32) {
    %c0_i32 = arith.constant 0 : i32
    %c0_i32_0 = arith.constant 0 : i32
    %c0_i32_1 = arith.constant 0 : i32
    return %arg0, %c0_i32, %c0_i32_0 : i32, i32, i32
  }
}

</mosaic_0001>

<bundles_post_ra>
// kernel: tpu_custom_call.1
= control target key start
LH: loop header
LB: loop body
LE: loop exit
PB: predicated region body
PF: predicated region fallthrough
CT: control target
= control target key end

     0   :  { %7 = vsyncpa [#allocation3], 0  ;;  %s324_s0 = inlined_call_operand.hbm [shape: f32[16,128], index: 0, kind: input, shape index: {}]   ;;  %s325_s1 = inlined_call_operand.hbm [shape: f32[16,128], index: 1, kind: input, shape index: {}]   ;;  %s326_s2 = inlined_call_operand.hbm [shape: f32[1,1,128], index: 2, kind: output, shape index: {}]  }
   0x1   :  { %8 = vsyncpa [#allocation6], 0 }
   0x2   :  { %9 = vsyncpa [#allocation4], 0  ;;  %s267_s9 = smov [#allocation2]   ;;  %s195_s13 = scalar_lea.hbm %s324_s0, 256 }
   0x3   :  { %s19_s10 = sshll.u32 %s267_s9, 4  ;;  %p196_p0 = scmp.ne.s32.totalorder %s324_s0, %s195_s13  ;;  %s20_s10 = int_to_ptr.vmem [resolvable:$true] %s19_s10 }
   0x4   :  { %p199_p1 = scmp.lt.u32.totalorder %s195_s13, %s324_s0 }
   0x6   :  { %p201_p2 = pnand %p199_p1, %p196_p0 }
   0x8   :  { %204 = shalt.err (!%p201_p2)
}
   0x9   :  { %s205_s18 = scalar_lea.vmem %s20_s10, 256  ;;  %p210_p4 = scmp.lt.s32.totalorder %s20_s10, %s20_s10 }
   0xa   :  { %p206_p3 = scmp.ne.s32.totalorder %s20_s10, %s205_s18  ;;  %p211_p5 = scmp.lt.s32.totalorder %s205_s18, %s205_s18 }
   0xc   :  { %p212_p6 = por %p211_p5, %p210_p4 }
   0xe   :  { %p213_p7 = pnand %p212_p6, %p206_p3 }
  0x10   :  { %216 = shalt.err (!%p213_p7)
}
  0x11   :  { %s268_s19 = smov 128   ;;  %s269_s20 = smov 8  }
  0x12   :  { %25 = dma.hbm_to_vmem [thread:$0]  %s324_s0, 256, %s20_s10, [#allocation3], %s268_s19, %s268_s19, %s269_s20  }
  0x13   :  { %s270_s23 = smov [#allocation5]   ;;  %s217_s27 = scalar_lea.hbm %s325_s1, 256 }
  0x14   :  { %s35_s24 = sshll.u32 %s270_s23, 4  ;;  %p218_p8 = scmp.ne.s32.totalorder %s325_s1, %s217_s27  ;;  %s36_s24 = int_to_ptr.vmem [resolvable:$true] %s35_s24 }
  0x15   :  { %p221_p9 = scmp.lt.u32.totalorder %s217_s27, %s325_s1 }
  0x17   :  { %p223_p10 = pnand %p221_p9, %p218_p8 }
  0x19   :  { %226 = shalt.err (!%p223_p10)
}
  0x1a   :  { %s227_s4 = scalar_lea.vmem %s36_s24, 256  ;;  %p232_p12 = scmp.lt.s32.totalorder %s36_s24, %s36_s24 }
  0x1b   :  { %p228_p11 = scmp.ne.s32.totalorder %s36_s24, %s227_s4  ;;  %p233_p13 = scmp.lt.s32.totalorder %s227_s4, %s227_s4 }
  0x1d   :  { %p234_p0 = por %p233_p13, %p232_p12 }
  0x1f   :  { %p235_p1 = pnand %p234_p0, %p228_p11 }
  0x21   :  { %238 = shalt.err (!%p235_p1)
}
  0x22   :  { %41 = dma.hbm_to_vmem [thread:$0]  %s325_s1, 256, %s36_s24, [#allocation6], %s268_s19, %s268_s19, %s269_s20  }
  0x23   :  { %261 = dma.done.wait [#allocation3], 256  }
  0x24   :  { %262 = vsyncadd [#allocation3], 4294967040 }
  0x25   :  { %263 = dma.done.wait [#allocation6], 256  }
  0x26   :  { %264 = vsyncadd [#allocation6], 4294967040  ;;  %v271_v0 = vmov 0.0   ;;  %v58_v1 = vld [vmem:[#allocation2] sm:$0xff]  ;;  %v59_v2 = vld [vmem:[#allocation2 + $0x8] sm:$0xff]  ;;  %s272_s1 = smov [#allocation7]  }
  0x27   :  { %57 = vst [vmem:[#allocation7] sm:$0x1] %v271_v0  ;;  %v68_v3 = vand.u32 2147483647, %v58_v1  ;;  %v69_v4 = vand.u32 2147483647, %v59_v2 }
  0x28   :  { %v60_v15 = vld [vmem:[#allocation5] sm:$0xff]  ;;  %v61_v16 = vld [vmem:[#allocation5 + $0x8] sm:$0xff]  ;;  %v62_v18 = vmax.f32 %v58_v1, 0.0  ;;  %v63_v22 = vmax.f32 %v59_v2, 0.0  ;;  %s167_s6 = sshll.u32 %s272_s1, 4  ;;  %s168_s6 = int_to_ptr.vmem [resolvable:$true] %s167_s6 }
  0x29   :  { %v70_v5 = vsub.f32 0.0, %v68_v3  ;;  %v71_v6 = vsub.f32 0.0, %v69_v4  ;;  %v64_v19 = vmul.f32 %v60_v15, %v58_v1  ;;  %v65_v23 = vmul.f32 %v61_v16, %v59_v2  ;;  %s239_s7 = scalar_lea.vmem %s168_s6, 16  ;;  %s243_s8 = scalar_lea.vmem %s168_s6, 32 }
  0x2a   :  { %v98_v41 = vceil.f32 %v60_v15  ;;  %v100_v42 = vfloor.f32 %v60_v15  ;;  %vm96_vm2 = vcmp.lt.f32.partialorder %v60_v15, 0.0  ;;  %v99_v43 = vceil.f32 %v61_v16  ;;  %p240_p2 = scmp.ne.s32.totalorder %s168_s6, %s239_s7  ;;  %p244_p3 = scmp.lt.s32.totalorder %s168_s6, %s168_s6 }
  0x2b   :  { %v72_v7 = vmul.f32 1.442695, %v70_v5  ;;  %v74_v8 = vmul.f32 1.442695, %v71_v6  ;;  %v66_v27 = vsub.f32 %v62_v18, %v64_v19  ;;  %v67_v30 = vsub.f32 %v63_v22, %v65_v23  ;;  %p245_p4 = scmp.lt.s32.totalorder %s243_s8, %s239_s7 }
  0x2c   :  { %v101_v44 = vfloor.f32 %v61_v16  ;;  %vm97_vm3 = vcmp.lt.f32.partialorder %v61_v16, 0.0  ;;  %v102_v45 = vsel %vm96_vm2, %v98_v41, %v100_v42 }
  0x2d   :  { %183 = vpow2.f32 %v72_v7  ;;  %v104_v47 = vmul.f32 -0.5, %v102_v45  ;;  %p246_p5 = por %p245_p4, %p244_p3 }
  0x2e   :  { %185 = vpow2.f32 %v74_v8  ;;  %v103_v46 = vsel %vm97_vm3, %v99_v43, %v101_v44  ;;  %v149_v3 = vld [vmem:[#allocation7] sm:$0x1] }
  0x2f   :  { %v105_v48 = vmul.f32 -0.5, %v103_v46  ;;  %v106_v51 = vadd.f32 0.75, %v104_v47  ;;  %p247_p6 = pnand %p246_p5, %p240_p2 }
  0x31   :  { %v107_v53 = vadd.f32 0.75, %v105_v48 }
  0x37   :  { %v184_v9 = vpop.eup %183 }
  0x38   :  { %v186_v10 = vpop.eup %185  ;;  %v76_v11 = vadd.f32 1.0, %v184_v9  ;;  %v79_v13 = vmul.f32 -0.5, %v184_v9  ;;  %v82_v20 = vand.u32 2147483647, %v184_v9 }
  0x39   :  { %v85_v12 = vadd.f32 1.0, %v186_v10  ;;  %v88_v14 = vmul.f32 -0.5, %v186_v10  ;;  %v91_v24 = vand.u32 2147483647, %v186_v10 }
  0x3a   :  { %187 = vlog2.f32 %v76_v11  ;;  %v80_v17 = vadd.f32 1.0, %v79_v13  ;;  %vm83_vm0 = vcmp.lt.f32.partialorder %v82_v20, 0.0004427343 }
  0x3b   :  { %189 = vlog2.f32 %v85_v12  ;;  %v89_v21 = vadd.f32 1.0, %v88_v14  ;;  %vm92_vm1 = vcmp.lt.f32.partialorder %v91_v24, 0.0004427343 }
  0x3c   :  { %v81_v25 = vmul.f32 %v184_v9, %v80_v17 }
  0x3d   :  { %v90_v28 = vmul.f32 %v186_v10, %v89_v21 }
  0x44   :  { %v188_v26 = vpop.eup %187 }
  0x45   :  { %v190_v29 = vpop.eup %189  ;;  %v78_v31 = vmul.f32 0.6931472, %v188_v26 }
  0x46   :  { %v87_v32 = vmul.f32 0.6931472, %v190_v29 }
  0x47   :  { %v84_v33 = vsel %vm83_vm0, %v81_v25, %v78_v31 }
  0x48   :  { %v93_v34 = vsel %vm92_vm1, %v90_v28, %v87_v32  ;;  %v94_v35 = vadd.f32 %v84_v33, %v66_v27 }
  0x49   :  { %v95_v36 = vadd.f32 %v93_v34, %v67_v30 }
  0x4a   :  { %v108_v37 = vsub.f32 0.0, %v94_v35 }
  0x4b   :  { %v109_v38 = vsub.f32 0.0, %v95_v36 }
  0x4c   :  { %v110_v39 = vmul.f32 1.442695, %v108_v37 }
  0x4d   :  { %v112_v40 = vmul.f32 1.442695, %v109_v38 }
  0x4e   :  { %191 = vpow2.f32 %v110_v39 }
  0x4f   :  { %193 = vpow2.f32 %v112_v40 }
  0x58   :  { %v192_v49 = vpop.eup %191 }
  0x59   :  { %v194_v50 = vpop.eup %193  ;;  %v114_v52 = vsub.f32 1.0, %v192_v49 }
  0x5a   :  { %v115_v54 = vsub.f32 1.0, %v194_v50 }
  0x5b   :  { %v116_v55 = vmul.f32 %v114_v52, %v114_v52 }
  0x5c   :  { %v117_v56 = vmul.f32 %v115_v54, %v115_v54 }
  0x5d   :  { %v118_v57 = vmul.f32 %v116_v55, %v106_v51 }
  0x5e   :  { %v119_v58 = vmul.f32 %v117_v56, %v107_v53 }
  0x5f   :  { %v120_v59 = vmul.f32 %v118_v57, %v94_v35 }
  0x60   :  { %v121_v60 = vmul.f32 %v119_v58, %v95_v36 }
  0x62   :  { %v152_v61 = vadd.f32 %v121_v60, %v120_v59 }
  0x64   :  { %v153_v62 = vrot.slane %v152_v61, 4 }
  0x66   :  { %v154_v63 = vadd.f32 %v153_v62, %v152_v61 }
  0x68   :  { %v155_v0 = vrot.slane %v154_v63, 2 }
  0x6a   :  { %v156_v1 = vadd.f32 %v155_v0, %v154_v63 }
  0x6c   :  { %v157_v2 = vrot.slane %v156_v1, 1 }
  0x6e   :  { %v158_v4 = vadd.f32 %v157_v2, %v156_v1 }
  0x70   :  { %v159_v5 = vadd.f32 %v158_v4, %v149_v3 }
  0x72   :  { %160 = vst [vmem:[#allocation7] sm:$0x1] %v159_v5 }
  0x73   :  { %250 = shalt.err (!%p247_p6)
}
  0x74   :  { %s251_s11 = scalar_lea.hbm %s326_s2, 16 }
  0x75   :  { %p252_p7 = scmp.ne.s32.totalorder %s326_s2, %s251_s11  ;;  %p255_p8 = scmp.lt.u32.totalorder %s251_s11, %s326_s2 }
  0x77   :  { %p257_p9 = pnand %p255_p8, %p252_p7 }
  0x79   :  { %260 = shalt.err (!%p257_p9)
}
  0x7a   :  { %170 = dma.vmem_to_hbm [thread:$0]  %s168_s6, 16, %s326_s2, [#allocation4]  }
  0x7b   :  { %265 = dma.done.wait [#allocation4], 16  }
  0x7c   :  { %266 = vsyncadd [#allocation4], 4294967280 }
  0x7d   :  { %174 = vsyncpa [#allocation3], 1 }
  0x7e   :  { %175 = vsyncpa [#allocation6], 1 }
  0x7f   :  { %176 = vsyncpa [#allocation4], 1 }

</bundles_post_ra>
